<compile_context>
chip_gen: v7x
topology: tpu7x:2x2x1
jax: 0.10.0
libtpu: 0.0.40
codegen_flags: <defaults>
</compile_context>

<pallas_src>
from functools import lru_cache

import numpy as np
import jax
import jax.numpy as jnp
from jax import lax
from jax.experimental import pallas as pl
from jax.experimental.pallas import tpu as pltpu


def make_landmark_weights(n_landmarks: int = 68) -> np.ndarray:
    """DECA weighted_landmark_loss weights (numpy, used only by the reference)."""
    w = np.ones((n_landmarks,), dtype=np.float32)
    w[5:7] = 2.0
    w[10:12] = 2.0
    # nose points
    w[27:36] = 1.5
    w[30] = 3.0
    w[31] = 3.0
    w[35] = 3.0
    # mouth
    w[60:68] = 1.5
    w[48:60] = 1.5
    w[48] = 3.0
    w[54] = 3.0
    return w


@lru_cache(maxsize=None)
def _make_landmark_loss_fn(B: int, N: int, loss_lmk: float):
    """Build (and cache) a jitted pallas-backed loss fn for fixed (B, N, loss_lmk)."""
    # mean over (B*N) and loss_lmk, folded straight into the weight literals.
    scale = float(loss_lmk) / float(B * N)

    def kernel(data_ref, cam_ref, out_ref):
        # data_ref: [4*B, N] f32, one (8,128)-padded VMEM tile.
        #   rows [0:B)=pred_x, [B:2B)=pred_y, [2B:3B)=gt_x, [3B:4B)=gt_y
        data = data_ref[...]
        px = data[0 * B:1 * B]                      # [B, N]
        py = data[1 * B:2 * B]
        gx = data[2 * B:3 * B]
        gy = data[3 * B:4 * B]

        # cam_ref: [3*B] f32 in SMEM, flat (s0, tx0, ty0, s1, tx1, ty1, ...).
        # Build per-batch [B, 1] columns from SMEM scalars via sublane-iota
        # selects (B is tiny; these co-issue for free under the input DMA).
        row = lax.broadcasted_iota(jnp.int32, (B, 1), 0)
        s = jnp.zeros((B, 1), jnp.float32)
        tx = jnp.zeros((B, 1), jnp.float32)
        ty = jnp.zeros((B, 1), jnp.float32)
        for b in range(B):
            s = jnp.where(row == b, cam_ref[3 * b + 0], s)
            tx = jnp.where(row == b, cam_ref[3 * b + 1], tx)
            ty = jnp.where(row == b, cam_ref[3 * b + 2], ty)

        # batch_orth_proj (xy only) + y negation, fused into the diff.
        dx = s * (px + tx) - gx                     # [B, N]
        dy = -(s * (py + ty)) - gy                  # [B, N]
        dist = jnp.sqrt(dx * dx + dy * dy)          # == torch.norm(.., dim=2)

        # DECA per-landmark weights built in-kernel from a lane iota, with the
        # mean/loss_lmk factor folded into every literal (no trailing vmul).
        idx = lax.broadcasted_iota(jnp.int32, (1, N), 1)
        w = jnp.full((1, N), 1.0 * scale, jnp.float32)
        w = jnp.where((idx >= 5) & (idx < 7), 2.0 * scale, w)
        w = jnp.where((idx >= 10) & (idx < 12), 2.0 * scale, w)
        w = jnp.where((idx >= 27) & (idx < 36), 1.5 * scale, w)
        w = jnp.where((idx >= 48) & (idx < 68), 1.5 * scale, w)
        w = jnp.where((idx == 30) | (idx == 31) | (idx == 35), 3.0 * scale, w)
        w = jnp.where((idx == 48) | (idx == 54), 3.0 * scale, w)

        out_ref[0, 0] = jnp.sum(dist * w)           # single reduce, scalar SMEM out

    call = pl.pallas_call(
        kernel,
        out_shape=jax.ShapeDtypeStruct((1, 1), jnp.float32),
        in_specs=[
            pl.BlockSpec(memory_space=pltpu.MemorySpace.VMEM),  # stacked [4B, N]
            pl.BlockSpec(memory_space=pltpu.MemorySpace.SMEM),  # cam flat [3B]
        ],
        out_specs=pl.BlockSpec(memory_space=pltpu.MemorySpace.SMEM),
        compiler_params=pltpu.CompilerParams(
            allow_input_fusion=[True, False],       # fuse the restack into the DMA
        ),
        cost_estimate=pl.CostEstimate(
            flops=10 * B * N,
            transcendentals=B * N,
            bytes_accessed=(4 * B * N + 3 * B + 1) * 4,
        ),
    )

    @jax.jit
    def fn(predicted_landmark3d, cam, landmark_gt):
        pred = predicted_landmark3d.astype(jnp.float32)
        gt = landmark_gt.astype(jnp.float32)
        camf = cam.astype(jnp.float32).reshape(-1)          # [3B] flat for SMEM
        # One [4*B, N] input: rows = (pred_x, pred_y, gt_x, gt_y) batch-major.
        data = jnp.concatenate(
            [pred[:, :, 0], pred[:, :, 1], gt[:, :, 0], gt[:, :, 1]], axis=0
        )
        return call(data, camf)[0, 0]

    return fn


def landmark_loss(predicted_landmark3d, cam, landmark_gt, loss_lmk: float = 1.0):
    """predicted_landmark3d: [B, N, 3], cam: [B, 3], landmark_gt: [B, N, >=2]."""
    B, N, _ = predicted_landmark3d.shape
    fn = _make_landmark_loss_fn(int(B), int(N), float(loss_lmk))
    return fn(predicted_landmark3d, cam, landmark_gt)


def _reference(pred, cam, gt, loss_lmk: float = 1.0):
    """Pure-JAX reference mirroring the PyTorch module."""
    scale = cam[:, None, 0:1]
    trans = cam[:, None, 1:3]
    proj = scale * (pred[:, :, :2] + trans)            # batch_orth_proj[:, :, :2]
    proj = proj.at[:, :, 1].set(-proj[:, :, 1])        # y flip
    w = jnp.asarray(make_landmark_weights(pred.shape[1]))
    d = jnp.sqrt(jnp.sum((proj - gt[:, :, :2]) ** 2, axis=2))
    return jnp.mean(d * w[None, :]) * loss_lmk


if __name__ == "__main__":
    key = jax.random.PRNGKey(0)
    k1, k2, k3 = jax.random.split(key, 3)

    B, N = 2, 68
    predicted_landmark2d = jax.random.normal(k1, (B, N, 3), dtype=jnp.float32)
    cam = jax.random.normal(k2, (B, 3), dtype=jnp.float32) * 0.1 + jnp.array(
        [1.0, 0.0, 0.0], dtype=jnp.float32
    )
    landmark_gt = jax.random.normal(k3, (B, N, 2), dtype=jnp.float32)

    loss = landmark_loss(predicted_landmark2d, cam, landmark_gt)
    loss = jax.block_until_ready(loss)

    ref = jax.block_until_ready(_reference(predicted_landmark2d, cam, landmark_gt))
    assert np.allclose(np.asarray(loss), np.asarray(ref), rtol=1e-5, atol=1e-5), (
        float(loss),
        float(ref),
    )
    print("KERNEL_OK")
</pallas_src>

<mosaic_0001>
module attributes {stable_mosaic.version = 11 : i64} {
  func.func @kernel(%arg0: memref<8x68xf32, #tpu.memory_space<vmem>>, %arg1: memref<6xf32, #tpu.memory_space<smem>>, %arg2: memref<1x1xf32, #tpu.memory_space<smem>>) attributes {dimension_semantics = [], scalar_prefetch = 0 : i64, scratch_operands = 0 : i64, tpu.core_type = #tpu.core_type<tc>} {
    %c0 = arith.constant 0 : index
    %c0_0 = arith.constant 0 : index
    %0 = vector.load %arg0[%c0, %c0_0] : memref<8x68xf32, #tpu.memory_space<vmem>>, vector<8x68xf32>
    %1 = vector.extract_strided_slice %0 {offsets = [0, 0], sizes = [2, 68], strides = [1, 1]} : vector<8x68xf32> to vector<2x68xf32>
    %2 = vector.extract_strided_slice %0 {offsets = [2, 0], sizes = [2, 68], strides = [1, 1]} : vector<8x68xf32> to vector<2x68xf32>
    %3 = vector.extract_strided_slice %0 {offsets = [4, 0], sizes = [2, 68], strides = [1, 1]} : vector<8x68xf32> to vector<2x68xf32>
    %4 = vector.extract_strided_slice %0 {offsets = [6, 0], sizes = [2, 68], strides = [1, 1]} : vector<8x68xf32> to vector<2x68xf32>
    %5 = tpu.iota {dimensions = array<i32: 0>} : vector<2x1xi32>
    %cst = arith.constant 0.000000e+00 : f32
    %6 = vector.broadcast %cst : f32 to vector<2x1xf32>
    %cst_1 = arith.constant 0.000000e+00 : f32
    %7 = vector.broadcast %cst_1 : f32 to vector<2x1xf32>
    %cst_2 = arith.constant 0.000000e+00 : f32
    %8 = vector.broadcast %cst_2 : f32 to vector<2x1xf32>
    %c0_i32 = arith.constant 0 : i32
    %9 = vector.broadcast %c0_i32 : i32 to vector<2x1xi32>
    %10 = arith.cmpi eq, %5, %9 : vector<2x1xi32>
    %c0_3 = arith.constant 0 : index
    %11 = memref.load %arg1[%c0_3] : memref<6xf32, #tpu.memory_space<smem>>
    %12 = vector.broadcast %11 : f32 to vector<2x1xf32>
    %13 = arith.select %10, %12, %6 : vector<2x1xi1>, vector<2x1xf32>
    %c0_i32_4 = arith.constant 0 : i32
    %14 = vector.broadcast %c0_i32_4 : i32 to vector<2x1xi32>
    %15 = arith.cmpi eq, %5, %14 : vector<2x1xi32>
    %c1 = arith.constant 1 : index
    %16 = memref.load %arg1[%c1] : memref<6xf32, #tpu.memory_space<smem>>
    %17 = vector.broadcast %16 : f32 to vector<2x1xf32>
    %18 = arith.select %15, %17, %7 : vector<2x1xi1>, vector<2x1xf32>
    %c0_i32_5 = arith.constant 0 : i32
    %19 = vector.broadcast %c0_i32_5 : i32 to vector<2x1xi32>
    %20 = arith.cmpi eq, %5, %19 : vector<2x1xi32>
    %c2 = arith.constant 2 : index
    %21 = memref.load %arg1[%c2] : memref<6xf32, #tpu.memory_space<smem>>
    %22 = vector.broadcast %21 : f32 to vector<2x1xf32>
    %23 = arith.select %20, %22, %8 : vector<2x1xi1>, vector<2x1xf32>
    %c1_i32 = arith.constant 1 : i32
    %24 = vector.broadcast %c1_i32 : i32 to vector<2x1xi32>
    %25 = arith.cmpi eq, %5, %24 : vector<2x1xi32>
    %c3 = arith.constant 3 : index
    %26 = memref.load %arg1[%c3] : memref<6xf32, #tpu.memory_space<smem>>
    %27 = vector.broadcast %26 : f32 to vector<2x1xf32>
    %28 = arith.select %25, %27, %13 : vector<2x1xi1>, vector<2x1xf32>
    %c1_i32_6 = arith.constant 1 : i32
    %29 = vector.broadcast %c1_i32_6 : i32 to vector<2x1xi32>
    %30 = arith.cmpi eq, %5, %29 : vector<2x1xi32>
    %c4 = arith.constant 4 : index
    %31 = memref.load %arg1[%c4] : memref<6xf32, #tpu.memory_space<smem>>
    %32 = vector.broadcast %31 : f32 to vector<2x1xf32>
    %33 = arith.select %30, %32, %18 : vector<2x1xi1>, vector<2x1xf32>
    %c1_i32_7 = arith.constant 1 : i32
    %34 = vector.broadcast %c1_i32_7 : i32 to vector<2x1xi32>
    %35 = arith.cmpi eq, %5, %34 : vector<2x1xi32>
    %c5 = arith.constant 5 : index
    %36 = memref.load %arg1[%c5] : memref<6xf32, #tpu.memory_space<smem>>
    %37 = vector.broadcast %36 : f32 to vector<2x1xf32>
    %38 = arith.select %35, %37, %23 : vector<2x1xi1>, vector<2x1xf32>
    %39 = vector.broadcast %33 : vector<2x1xf32> to vector<2x68xf32>
    %40 = arith.addf %1, %39 : vector<2x68xf32>
    %41 = vector.broadcast %28 : vector<2x1xf32> to vector<2x68xf32>
    %42 = arith.mulf %41, %40 : vector<2x68xf32>
    %43 = arith.subf %42, %3 : vector<2x68xf32>
    %44 = vector.broadcast %38 : vector<2x1xf32> to vector<2x68xf32>
    %45 = arith.addf %2, %44 : vector<2x68xf32>
    %46 = vector.broadcast %28 : vector<2x1xf32> to vector<2x68xf32>
    %47 = arith.mulf %46, %45 : vector<2x68xf32>
    %cst_8 = arith.constant 0.000000e+00 : f32
    %48 = vector.broadcast %cst_8 : f32 to vector<2x68xf32>
    %49 = arith.subf %48, %47 : vector<2x68xf32>
    %50 = arith.subf %49, %4 : vector<2x68xf32>
    %51 = arith.mulf %43, %43 : vector<2x68xf32>
    %52 = arith.mulf %50, %50 : vector<2x68xf32>
    %53 = arith.addf %51, %52 : vector<2x68xf32>
    %54 = math.sqrt %53 : vector<2x68xf32>
    %55 = tpu.iota {dimensions = array<i32: 1>} : vector<1x68xi32>
    %cst_9 = arith.constant 0.0073529412 : f32
    %56 = vector.broadcast %cst_9 : f32 to vector<1x68xf32>
    %c5_i32 = arith.constant 5 : i32
    %57 = vector.broadcast %c5_i32 : i32 to vector<1x68xi32>
    %58 = arith.cmpi sge, %55, %57 : vector<1x68xi32>
    %c7_i32 = arith.constant 7 : i32
    %59 = vector.broadcast %c7_i32 : i32 to vector<1x68xi32>
    %60 = arith.cmpi slt, %55, %59 : vector<1x68xi32>
    %61 = arith.andi %58, %60 : vector<1x68xi1>
    %cst_10 = arith.constant 0.0147058824 : f32
    %62 = vector.broadcast %cst_10 : f32 to vector<1x68xf32>
    %63 = arith.select %61, %62, %56 : vector<1x68xi1>, vector<1x68xf32>
    %c10_i32 = arith.constant 10 : i32
    %64 = vector.broadcast %c10_i32 : i32 to vector<1x68xi32>
    %65 = arith.cmpi sge, %55, %64 : vector<1x68xi32>
    %c12_i32 = arith.constant 12 : i32
    %66 = vector.broadcast %c12_i32 : i32 to vector<1x68xi32>
    %67 = arith.cmpi slt, %55, %66 : vector<1x68xi32>
    %68 = arith.andi %65, %67 : vector<1x68xi1>
    %cst_11 = arith.constant 0.0147058824 : f32
    %69 = vector.broadcast %cst_11 : f32 to vector<1x68xf32>
    %70 = arith.select %68, %69, %63 : vector<1x68xi1>, vector<1x68xf32>
    %c27_i32 = arith.constant 27 : i32
    %71 = vector.broadcast %c27_i32 : i32 to vector<1x68xi32>
    %72 = arith.cmpi sge, %55, %71 : vector<1x68xi32>
    %c36_i32 = arith.constant 36 : i32
    %73 = vector.broadcast %c36_i32 : i32 to vector<1x68xi32>
    %74 = arith.cmpi slt, %55, %73 : vector<1x68xi32>
    %75 = arith.andi %72, %74 : vector<1x68xi1>
    %cst_12 = arith.constant 0.011029412 : f32
    %76 = vector.broadcast %cst_12 : f32 to vector<1x68xf32>
    %77 = arith.select %75, %76, %70 : vector<1x68xi1>, vector<1x68xf32>
    %c48_i32 = arith.constant 48 : i32
    %78 = vector.broadcast %c48_i32 : i32 to vector<1x68xi32>
    %79 = arith.cmpi sge, %55, %78 : vector<1x68xi32>
    %c68_i32 = arith.constant 68 : i32
    %80 = vector.broadcast %c68_i32 : i32 to vector<1x68xi32>
    %81 = arith.cmpi slt, %55, %80 : vector<1x68xi32>
    %82 = arith.andi %79, %81 : vector<1x68xi1>
    %cst_13 = arith.constant 0.011029412 : f32
    %83 = vector.broadcast %cst_13 : f32 to vector<1x68xf32>
    %84 = arith.select %82, %83, %77 : vector<1x68xi1>, vector<1x68xf32>
    %c30_i32 = arith.constant 30 : i32
    %85 = vector.broadcast %c30_i32 : i32 to vector<1x68xi32>
    %86 = arith.cmpi eq, %55, %85 : vector<1x68xi32>
    %c31_i32 = arith.constant 31 : i32
    %87 = vector.broadcast %c31_i32 : i32 to vector<1x68xi32>
    %88 = arith.cmpi eq, %55, %87 : vector<1x68xi32>
    %89 = arith.ori %86, %88 : vector<1x68xi1>
    %c35_i32 = arith.constant 35 : i32
    %90 = vector.broadcast %c35_i32 : i32 to vector<1x68xi32>
    %91 = arith.cmpi eq, %55, %90 : vector<1x68xi32>
    %92 = arith.ori %89, %91 : vector<1x68xi1>
    %cst_14 = arith.constant 0.0220588241 : f32
    %93 = vector.broadcast %cst_14 : f32 to vector<1x68xf32>
    %94 = arith.select %92, %93, %84 : vector<1x68xi1>, vector<1x68xf32>
    %c48_i32_15 = arith.constant 48 : i32
    %95 = vector.broadcast %c48_i32_15 : i32 to vector<1x68xi32>
    %96 = arith.cmpi eq, %55, %95 : vector<1x68xi32>
    %c54_i32 = arith.constant 54 : i32
    %97 = vector.broadcast %c54_i32 : i32 to vector<1x68xi32>
    %98 = arith.cmpi eq, %55, %97 : vector<1x68xi32>
    %99 = arith.ori %96, %98 : vector<1x68xi1>
    %cst_16 = arith.constant 0.0220588241 : f32
    %100 = vector.broadcast %cst_16 : f32 to vector<1x68xf32>
    %101 = arith.select %99, %100, %94 : vector<1x68xi1>, vector<1x68xf32>
    %102 = vector.broadcast %101 : vector<1x68xf32> to vector<2x68xf32>
    %103 = arith.mulf %54, %102 : vector<2x68xf32>
    %104 = vector.shape_cast %103 : vector<2x68xf32> to vector<1x2x68xf32>
    %cst_17 = arith.constant dense<0.000000e+00> : vector<1xf32>
    %105 = vector.multi_reduction <add>, %104, %cst_17 [1, 2] : vector<1x2x68xf32> to vector<1xf32>
    %106 = vector.shape_cast %105 : vector<1xf32> to vector<1x1x1xf32>
    %107 = vector.extract %106[0, 0, 0] : f32 from vector<1x1x1xf32>
    %c0_18 = arith.constant 0 : index
    %c0_19 = arith.constant 0 : index
    %108 = memref.load %arg2[%c0_18, %c0_19] : memref<1x1xf32, #tpu.memory_space<smem>>
    memref.store %107, %arg2[%c0_18, %c0_19] : memref<1x1xf32, #tpu.memory_space<smem>>
    return
  }
}

</mosaic_0001>

<bundles_post_ra>
// kernel: fn.2
= control target key start
LH: loop header
LB: loop body
LE: loop exit
PB: predicated region body
PF: predicated region fallthrough
CT: control target
= control target key end

     0   :  { %s476_s0 = inlined_call_operand.vmem [shape: f32[6], index: 0, kind: input, shape index: {}]   ;;  %s477_s1 = inlined_call_operand.vmem [shape: f32[2,68], index: 1, kind: input, shape index: {}]   ;;  %s478_s2 = inlined_call_operand.<no memory space> [shape: f32[], index: 2, kind: input, shape index: {}]   ;;  %s479_s3 = inlined_call_operand.vmem [shape: f32[2,68], index: 3, kind: input, shape index: {}]   ;;  %s480_s4 = inlined_call_operand.vmem [shape: f32[2,68], index: 4, kind: input, shape index: {}]   ;;  %s481_s5 = inlined_call_operand.vmem [shape: f32[2,68], index: 5, kind: input, shape index: {}]   ;;  %s482_s6 = inlined_call_operand.hbm [shape: f32[1,1], index: 6, kind: output, shape index: {}]  }
   0x1   :  { %v11_v0 = vstv %s478_s2 }
   0x2   :  { %15 = vsyncpa [#allocation24], 0 }
   0x3   :  { %16 = vsyncpa [#allocation23], 0  ;;  %s61_s25 = sshll.u32 %s476_s0, 4  ;;  %s62_s25 = int_to_ptr.vmem [resolvable:$true] %s61_s25 }
   0x4   :  { %s339_s26 = scalar_lea.vmem %s62_s25, 16  ;;  %p344_p1 = scmp.lt.s32.totalorder %s62_s25, %s62_s25 }
   0x5   :  { %p340_p0 = scmp.ne.s32.totalorder %s62_s25, %s339_s26  ;;  %p345_p2 = scmp.lt.s32.totalorder %s339_s26, %s339_s26 }
   0x7   :  { %p346_p3 = por %p345_p2, %p344_p1 }
   0x9   :  { %p347_p4 = pnand %p346_p3, %p340_p0 }
   0xb   :  { %350 = shalt.err (!%p347_p4)
}
   0xc   :  { %s365_s27 = smov [#allocation22]  }
   0xd   :  { %64 = dma.vmem_to_smem %s62_s25, 16, %s365_s27, [#allocation24]  }
   0xe   :  { %361 = dma.done.wait [#allocation24], 16  }
   0xf   :  { %362 = vsyncadd [#allocation24], 4294967280 }
  0x10   :  { %68 = sfence }
  0x11   :  { %v126_v1 = vlaneseq  ;;  %v125_v2 = vld [vmem:[%s477_s1] sm:$0x3]  ;;  %s414_s0 = sld [smem:[#allocation22 + $0x1]]  ;;  %s422_s9 = sld [smem:[#allocation22 + $0x2]]  ;;  %vm136_vm2 = vcmask 1041408   ;;  %vm155_vm4 = vcmask 1043456  }
  0x12   :  { %v144_v5 = vld [vmem:[%s479_s3] sm:$0x3]  ;;  %s427_s1 = sld [smem:[#allocation22 + $0x4]]  ;;  %s430_s12 = sld [smem:[#allocation22]]  ;;  %vm174_vm5 = vcmask 1045504  }
  0x13   :  { %v127_v3 = vshrl.u32 %v126_v1, 7  ;;  %v412_v4 = vand.u32 127, %v126_v1  ;;  %v177_v6 = vld [vmem:[%s481_s5] sm:$0x3]  ;;  %s331_s3 = sld [smem:[#allocation22 + $0x5]]  ;;  %s351_s15 = scalar_lea.hbm %s482_s6, 16 }
  0x14   :  { %v163_v8 = vld [vmem:[%s480_s4] sm:$0x3]  ;;  %s329_s4 = sld [smem:[#allocation22 + $0x3]]  ;;  %v366_v51 = vmov 0.007352941   ;;  %p352_p5 = scmp.ne.s32.totalorder %s482_s6, %s351_s15 }
  0x15   :  { %v128_v7 = vadd.s32 8, %v127_v3  ;;  %vm181_vm0 = vcmp.lt.s32.totalorder %v127_v3, 2  ;;  %vm134_vm1 = vcmp.lt.s32.totalorder %v412_v4, 68  ;;  %vm205_vm6 = vcmp.eq.s32.totalorder %v127_v3, 0  ;;  %p355_p6 = scmp.lt.u32.totalorder %s351_s15, %s482_s6 }
  0x16   :  { %v182_v9 = vsel %vm181_vm0, %v177_v6, %v11_v0  ;;  %vm215_vm7 = vcmp.eq.s32.totalorder %v127_v3, 1  ;;  %vm255_vm8 = vcmp.ge.s32.totalorder %v412_v4, 5  ;;  %vm256_vm9 = vcmp.lt.s32.totalorder %v412_v4, 7 }
  0x17   :  { %vm129_vm3 = vcmp.lt.s32.totalorder %v128_v7, 10  ;;  %v187_v19 = vsel %vm134_vm1, %v182_v9, %v11_v0  ;;  %v210_v22 = vstv %s414_s0  ;;  %v213_v24 = vstv %s422_s9  ;;  %vm257_vm10 = vmand %vm255_vm8, %vm256_vm9  ;;  %p357_p7 = pnand %p355_p6, %p352_p5 }
  0x18   :  { %v130_v10 = vsel %vm129_vm3, %v125_v2, %v11_v0  ;;  %v149_v11 = vsel %vm129_vm3, %v144_v5, %v11_v0  ;;  %v168_v12 = vsel %vm129_vm3, %v163_v8, %v11_v0  ;;  %v211_v26 = vsel %vm205_vm6, %v210_v22, 0.0 }
  0x19   :  { %v135_v13 = vsel %vm134_vm1, %v130_v10, %v11_v0  ;;  %v154_v14 = vsel %vm134_vm1, %v149_v11, %v11_v0  ;;  %v173_v15 = vsel %vm134_vm1, %v168_v12, %v11_v0  ;;  %v214_v27 = vsel %vm205_vm6, %v213_v24, 0.0 }
  0x1a   :  { %v137_v16 = vsel %vm136_vm2, %v135_v13, %v11_v0  ;;  %v156_v17 = vsel %vm155_vm4, %v154_v14, %v11_v0  ;;  %v175_v18 = vsel %vm174_vm5, %v173_v15, %v11_v0  ;;  %v220_v28 = vstv %s427_s1 }
  0x1b   :  { %v157_v20 = vrot.slane %v156_v17, 4  ;;  %v176_v21 = vrot.slane %v175_v18, 6  ;;  %v138_v23 = vrot.slane %v137_v16, 2  ;;  %v207_v29 = vstv %s430_s12 }
  0x1c   :  { %v223_v30 = vstv %s331_s3  ;;  %v221_v33 = vsel %vm215_vm7, %v220_v28, %v211_v26  ;;  %v208_v36 = vsel %vm205_vm6, %v207_v29, 0.0  ;;  %v217_v37 = vstv %s329_s4 }
  0x1d   :  { %v190_v25 = vmax.f32 %v187_v19, %v176_v21  ;;  %v224_v32 = vsel %vm215_vm7, %v223_v30, %v214_v27  ;;  %v218_v41 = vsel %vm215_vm7, %v217_v37, %v208_v36  ;;  %vm259_vm11 = vcmp.ge.s32.totalorder %v412_v4, 10 }
  0x1e   :  { %v232_v34 = vrot.slane %v224_v32, 6  ;;  %vm260_vm12 = vcmp.lt.s32.totalorder %v412_v4, 12  ;;  %v258_v52 = vsel %vm257_vm10, 0.014705882, %v366_v51  ;;  %vm263_vm14 = vcmp.ge.s32.totalorder %v412_v4, 27 }
  0x1f   :  { %v194_v31 = vmax.f32 %v190_v25, %v157_v20  ;;  %vm261_vm13 = vmand %vm259_vm11, %vm260_vm12  ;;  %vm264_vm15 = vcmp.lt.s32.totalorder %v412_v4, 36  ;;  %vm267_vm0 = vcmp.ge.s32.totalorder %v412_v4, 48  ;;  %vm271_vm3 = vcmp.eq.s32.totalorder %v412_v4, 30 }
  0x20   :  { %v262_v54 = vsel %vm261_vm13, 0.014705882, %v258_v52  ;;  %vm265_vm2 = vmand %vm263_vm14, %vm264_vm15  ;;  %vm272_vm4 = vcmp.eq.s32.totalorder %v412_v4, 31  ;;  %vm274_vm7 = vcmp.eq.s32.totalorder %v412_v4, 35  ;;  %vm277_vm9 = vcmp.eq.s32.totalorder %v412_v4, 48 }
  0x21   :  { %v198_v35 = vmax.f32 %v194_v31, %v138_v23  ;;  %vm269_vm5 = vmand %vm267_vm0, %vm134_vm1  ;;  %v266_v55 = vsel %vm265_vm2, 0.011029412, %v262_v54  ;;  %vm278_vm10 = vcmp.eq.s32.totalorder %v412_v4, 54  ;;  %vm282_vm1 = vcmask 549888  }
  0x22   :  { %vm273_vm6 = vmor %vm271_vm3, %vm272_vm4  ;;  %v270_v56 = vsel %vm269_vm5, 0.011029412, %v266_v55 }
  0x23   :  { %v225_v38 = vadd.f32 %v221_v33, %v198_v35  ;;  %v228_v39 = vrot.slane %v198_v35, 4  ;;  %v234_v40 = vadd.f32 %v232_v34, %v198_v35  ;;  %v240_v46 = vrot.slane %v198_v35, 6  ;;  %vm275_vm8 = vmor %vm273_vm6, %vm274_vm7 }
  0x24   :  { %v276_v57 = vsel %vm275_vm8, 0.022058824, %v270_v56  ;;  %vm279_vm11 = vmor %vm277_vm9, %vm278_vm10 }
  0x25   :  { %v226_v42 = vmul.f32 %v225_v38, %v218_v41  ;;  %v236_v43 = vrot.slane %v234_v40, 2  ;;  %v280_v61 = vsel %vm279_vm11, 0.022058824, %v276_v57 }
  0x27   :  { %v230_v44 = vsub.f32 %v226_v42, %v228_v39  ;;  %v238_v45 = vmul.f32 %v236_v43, %v218_v41 }
  0x29   :  { %v239_v47 = vsub.f32 0.0, %v238_v45  ;;  %v243_v49 = vmul.f32 %v230_v44, %v230_v44 }
  0x2b   :  { %v242_v48 = vsub.f32 %v239_v47, %v240_v46 }
  0x2d   :  { %v244_v50 = vmul.f32 %v242_v48, %v242_v48 }
  0x2f   :  { %v245_v53 = vadd.f32 %v244_v50, %v243_v49 }
  0x31   :  { %337 = vrsqrt.f32 %v245_v53  ;;  %vm248_vm12 = vcmp.eq.f32.partialorder %v245_v53, inf  ;;  %v251_v59 = vand.u32 2147483648, %v245_v53  ;;  %vm250_vm13 = vcmp.eq.f32.partialorder %v245_v53, 0.0 }
  0x3b   :  { %v338_v58 = vpop.eup %337 }
  0x3c   :  { %v247_v60 = vmul.f32 %v338_v58, %v245_v53 }
  0x3e   :  { %v249_v62 = vsel %vm248_vm12, %v245_v53, %v247_v60 }
  0x3f   :  { %v252_v63 = vsel %vm250_vm13, %v251_v59, %v249_v62 }
  0x40   :  { %v281_v0 = vmul.f32 %v280_v61, %v252_v63 }
  0x42   :  { %v283_v1 = vsel %vm282_vm1, %v281_v0, 0.0 }
  0x43   :  { %284 = vadd.xlane.f32.xlu0 %v283_v1 }
  0xd0   :  { %v285_v2 = vpop.xlane.xlu0 %284 }
  0xd1   :  { %v286_v3 = vrot.slane %v285_v2, 4 }
  0xd3   :  { %v287_v5 = vadd.f32 %v286_v3, %v285_v2 }
  0xd5   :  { %v288_v6 = vrot.slane %v287_v5, 2 }
  0xd7   :  { %v289_v7 = vadd.f32 %v288_v6, %v287_v5 }
  0xd9   :  { %v290_v4 = vrot.slane %v289_v7, 1 }
  0xdb   :  { %v291_v8 = vadd.f32 %v290_v4, %v289_v7 }
  0xdd   :  { %332 = vpush %v291_v8 }
 0x10e   :  { %s333_s5 = spop %332 }
 0x10f   :  { %294 = sst [smem:[#allocation25]] %s333_s5 }
 0x110   :  { %360 = shalt.err (!%p357_p7)
}
 0x111   :  { %s367_s20 = smov [#allocation25]  }
 0x112   :  { %302 = dma.smem_to_hbm %s367_s20, 16, %s482_s6, [#allocation23]  }
 0x113   :  { %363 = dma.done.wait [#allocation23], 16  }
 0x114   :  { %364 = vsyncadd [#allocation23], 4294967280 }
 0x115   :  { %306 = sfence }
 0x116   :  { %307 = vsyncpa [#allocation23], 1 }
 0x117   :  { %308 = vsyncpa [#allocation24], 1 }

</bundles_post_ra>
